<compile_context>
chip_gen: v6e
topology: v6e:2x2x1
jax: 0.10.0
libtpu: 0.0.40
codegen_flags: <defaults>
</compile_context>

<pallas_src>
import jax
import jax.numpy as jnp
from jax.experimental import pallas as pl
from jax.experimental.pallas import tpu as pltpu

LANES = 128          # lane (fast) axis width
SUBLANE_MULT = 16    # row multiple; safe for both f32 (8) and bf16 (16) tiling


def _round_up(n, m):
    return ((n + m - 1) // m) * m


def mlp_kernel(x_ref, w1_ref, b1_ref, w2_ref, b2_ref, o_ref):
    # x_ref: (2, rows_block, 128) VMEM  -- plane 0 = feature 0, plane 1 = feature 1
    # o_ref: (rows_block, 128) VMEM
    # w1_ref: (4,) SMEM flat [w00, w01, w10, w11]  (layout for y = x @ W + b)
    # b1_ref: (2,) SMEM; w2_ref: (2,) SMEM; b2_ref: (1,) SMEM
    x0 = x_ref[0].astype(jnp.float32)   # (rows_block, 128), f32 compute
    x1 = x_ref[1].astype(jnp.float32)

    def sigmoid(z):
        # One EUP op per activation; the extra mul/add land in the 4-wide VALU.
        return 0.5 * (jnp.tanh(0.5 * z) + 1.0)

    # Hidden layer: pure VPU FMAs + EUP activations (no MXU traffic).
    h0 = sigmoid(x0 * w1_ref[0] + x1 * w1_ref[2] + b1_ref[0])
    h1 = sigmoid(x0 * w1_ref[1] + x1 * w1_ref[3] + b1_ref[1])

    # Output layer.
    y = sigmoid(h0 * w2_ref[0] + h1 * w2_ref[1] + b2_ref[0])

    o_ref[...] = y.astype(o_ref.dtype)


def mlp_forward_planar(x_planes, w1, b1, w2, b2, *, rows_block=8192,
                       core_parallel=False):
    """Zero-copy entry point.

    x_planes: (2, rows, 128) -- feature-major, batch packed along rows*128 lanes,
              rows a multiple of 16 and of rows_block.
    Returns the (rows, 128) output plane in x_planes.dtype (no wrapper copies).
    """
    io_dtype = x_planes.dtype
    _, rows, lanes = x_planes.shape
    assert lanes == LANES
    rows_block = max(SUBLANE_MULT,
                     (min(rows_block, rows) // SUBLANE_MULT) * SUBLANE_MULT)
    assert rows % rows_block == 0

    w1_flat = w1.reshape(-1).astype(jnp.float32)   # (4,)
    b1_flat = b1.reshape(-1).astype(jnp.float32)   # (2,)
    w2_flat = w2.reshape(-1).astype(jnp.float32)   # (2,)
    b2_flat = b2.reshape(-1).astype(jnp.float32)   # (1,)

    # VMEM budget: x block (2 planes) + out block, double-buffered, + headroom.
    tile_bytes = rows_block * LANES * jnp.dtype(io_dtype).itemsize
    vmem_limit = int(min(48 << 20, max(32 << 20, 6 * tile_bytes + (4 << 20))))

    # CORE_PARALLEL shards the batch axis across v7x's two TensorCores.
    semantics = (pltpu.CORE_PARALLEL if core_parallel else pltpu.PARALLEL,)

    return pl.pallas_call(
        mlp_kernel,
        out_shape=jax.ShapeDtypeStruct((rows, LANES), io_dtype),
        grid=(rows // rows_block,),
        in_specs=[
            pl.BlockSpec((2, rows_block, LANES), lambda i: (0, i, 0)),  # x planes
            pl.BlockSpec(memory_space=pltpu.MemorySpace.SMEM),          # w1 scalars
            pl.BlockSpec(memory_space=pltpu.MemorySpace.SMEM),          # b1 scalars
            pl.BlockSpec(memory_space=pltpu.MemorySpace.SMEM),          # w2 scalars
            pl.BlockSpec(memory_space=pltpu.MemorySpace.SMEM),          # b2 scalar
        ],
        out_specs=pl.BlockSpec((rows_block, LANES), lambda i: (i, 0)),
        compiler_params=pltpu.CompilerParams(
            dimension_semantics=semantics,
            vmem_limit_bytes=vmem_limit,
        ),
    )(x_planes, w1_flat, b1_flat, w2_flat, b2_flat)


def mlp_forward(x, w1, b1, w2, b2, *, max_rows_block=8192,
                io_dtype=jnp.float32, core_parallel=False):
    """x: (B, 2); w1: (2,2) (in,out); b1: (2,); w2: (2,1); b2: (1,).

    Computes sigmoid(sigmoid(x @ w1 + b1) @ w2 + b2), returns (B, 1) float32.
    io_dtype=jnp.bfloat16 halves HBM bytes moved (compute stays f32).
    """
    B = x.shape[0]
    if B == 0:
        return jnp.zeros((0, 1), jnp.float32)

    rows = _round_up(pl.cdiv(B, LANES), SUBLANE_MULT)   # 128-lane rows
    rows_block = max(SUBLANE_MULT,
                     (min(max_rows_block, rows) // SUBLANE_MULT) * SUBLANE_MULT)
    rows = _round_up(rows, rows_block)
    Bp = rows * LANES

    # Single fused pad + transpose + reshape into the planar layout.
    # TODO(synk): callers that can produce/consume the (2, rows, 128) planar
    # layout directly should use mlp_forward_planar and skip these HBM passes.
    x_t = jnp.pad(x.astype(io_dtype).T, ((0, 0), (0, Bp - B)))   # (2, Bp)
    x_planes = x_t.reshape(2, rows, LANES)

    y_plane = mlp_forward_planar(x_planes, w1, b1, w2, b2,
                                 rows_block=rows_block,
                                 core_parallel=core_parallel)

    return y_plane.reshape(-1)[:B].reshape(B, 1).astype(jnp.float32)


def init_params(key):
    # Deterministic init mimicking nn.Linear's uniform(-1/sqrt(fan_in), ...).
    k1, k2, k3, k4 = jax.random.split(key, 4)
    bound = 1.0 / jnp.sqrt(2.0)  # fan_in = 2 for both layers
    # Stored as (in_features, out_features) == PyTorch weight.T (so y = x @ W + b).
    w1 = jax.random.uniform(k1, (2, 2), jnp.float32, -bound, bound)
    b1 = jax.random.uniform(k2, (2,), jnp.float32, -bound, bound)
    w2 = jax.random.uniform(k3, (2, 1), jnp.float32, -bound, bound)
    b2 = jax.random.uniform(k4, (1,), jnp.float32, -bound, bound)
    return w1, b1, w2, b2


if __name__ == "__main__":
    key = jax.random.PRNGKey(0)
    kx, kp = jax.random.split(key)

    batch = 8
    x = jax.random.normal(kx, (batch, 2), dtype=jnp.float32)
    w1, b1, w2, b2 = init_params(kp)

    # f32 I/O path.
    out = jax.block_until_ready(mlp_forward(x, w1, b1, w2, b2))
    ref = jax.nn.sigmoid(jax.nn.sigmoid(x @ w1 + b1[None, :]) @ w2 + b2[None, :])
    assert out.shape == (batch, 1)
    assert jnp.allclose(out, ref, atol=1e-5), "mismatch vs reference (f32 I/O)"

    # bf16 HBM I/O path (f32 compute inside the kernel) -- looser tolerance.
    out_bf16 = jax.block_until_ready(
        mlp_forward(x, w1, b1, w2, b2, io_dtype=jnp.bfloat16))
    assert jnp.allclose(out_bf16, ref, atol=2e-2), "mismatch vs reference (bf16 I/O)"

    print("KERNEL_OK")
</pallas_src>

<mosaic_0001>
module attributes {stable_mosaic.version = 11 : i64} {
  func.func @mlp_kernel(%arg0: i32, %arg1: memref<2x16x128xf32, #tpu.memory_space<vmem>>, %arg2: memref<4xf32, #tpu.memory_space<smem>>, %arg3: memref<2xf32, #tpu.memory_space<smem>>, %arg4: memref<2xf32, #tpu.memory_space<smem>>, %arg5: memref<1xf32, #tpu.memory_space<smem>>, %arg6: memref<16x128xf32, #tpu.memory_space<vmem>>) attributes {dimension_semantics = [#tpu.dimension_semantics<parallel>], iteration_bounds = array<i64: 1>, scalar_prefetch = 0 : i64, scratch_operands = 0 : i64, tpu.core_type = #tpu.core_type<tc>, window_params = [{transform_indices = @transform_0, window_bounds = array<i64: 2, 16, 128>}, {transform_indices = @transform_1, window_bounds = array<i64: 4>}, {transform_indices = @transform_2, window_bounds = array<i64: 2>}, {transform_indices = @transform_3, window_bounds = array<i64: 2>}, {transform_indices = @transform_4, window_bounds = array<i64: 1>}, {transform_indices = @transform_5, window_bounds = array<i64: 16, 128>}]} {
    %c0 = arith.constant 0 : index
    %c0_0 = arith.constant 0 : index
    %c0_1 = arith.constant 0 : index
    %0 = vector.load %arg1[%c0, %c0_0, %c0_1] : memref<2x16x128xf32, #tpu.memory_space<vmem>>, vector<1x16x128xf32>
    %1 = vector.shape_cast %0 : vector<1x16x128xf32> to vector<16x128xf32>
    %c1 = arith.constant 1 : index
    %c0_2 = arith.constant 0 : index
    %c0_3 = arith.constant 0 : index
    %2 = vector.load %arg1[%c1, %c0_2, %c0_3] : memref<2x16x128xf32, #tpu.memory_space<vmem>>, vector<1x16x128xf32>
    %3 = vector.shape_cast %2 : vector<1x16x128xf32> to vector<16x128xf32>
    %c0_4 = arith.constant 0 : index
    %4 = memref.load %arg2[%c0_4] : memref<4xf32, #tpu.memory_space<smem>>
    %5 = vector.broadcast %4 : f32 to vector<16x128xf32>
    %6 = arith.mulf %1, %5 : vector<16x128xf32>
    %c2 = arith.constant 2 : index
    %7 = memref.load %arg2[%c2] : memref<4xf32, #tpu.memory_space<smem>>
    %8 = vector.broadcast %7 : f32 to vector<16x128xf32>
    %9 = arith.mulf %3, %8 : vector<16x128xf32>
    %10 = arith.addf %6, %9 : vector<16x128xf32>
    %c0_5 = arith.constant 0 : index
    %11 = memref.load %arg3[%c0_5] : memref<2xf32, #tpu.memory_space<smem>>
    %12 = vector.broadcast %11 : f32 to vector<16x128xf32>
    %13 = arith.addf %10, %12 : vector<16x128xf32>
    %cst = arith.constant 5.000000e-01 : f32
    %14 = vector.broadcast %cst : f32 to vector<16x128xf32>
    %15 = arith.mulf %14, %13 : vector<16x128xf32>
    %16 = math.tanh %15 : vector<16x128xf32>
    %cst_6 = arith.constant 1.000000e+00 : f32
    %17 = vector.broadcast %cst_6 : f32 to vector<16x128xf32>
    %18 = arith.addf %16, %17 : vector<16x128xf32>
    %cst_7 = arith.constant 5.000000e-01 : f32
    %19 = vector.broadcast %cst_7 : f32 to vector<16x128xf32>
    %20 = arith.mulf %19, %18 : vector<16x128xf32>
    %c1_8 = arith.constant 1 : index
    %21 = memref.load %arg2[%c1_8] : memref<4xf32, #tpu.memory_space<smem>>
    %22 = vector.broadcast %21 : f32 to vector<16x128xf32>
    %23 = arith.mulf %1, %22 : vector<16x128xf32>
    %c3 = arith.constant 3 : index
    %24 = memref.load %arg2[%c3] : memref<4xf32, #tpu.memory_space<smem>>
    %25 = vector.broadcast %24 : f32 to vector<16x128xf32>
    %26 = arith.mulf %3, %25 : vector<16x128xf32>
    %27 = arith.addf %23, %26 : vector<16x128xf32>
    %c1_9 = arith.constant 1 : index
    %28 = memref.load %arg3[%c1_9] : memref<2xf32, #tpu.memory_space<smem>>
    %29 = vector.broadcast %28 : f32 to vector<16x128xf32>
    %30 = arith.addf %27, %29 : vector<16x128xf32>
    %cst_10 = arith.constant 5.000000e-01 : f32
    %31 = vector.broadcast %cst_10 : f32 to vector<16x128xf32>
    %32 = arith.mulf %31, %30 : vector<16x128xf32>
    %33 = math.tanh %32 : vector<16x128xf32>
    %cst_11 = arith.constant 1.000000e+00 : f32
    %34 = vector.broadcast %cst_11 : f32 to vector<16x128xf32>
    %35 = arith.addf %33, %34 : vector<16x128xf32>
    %cst_12 = arith.constant 5.000000e-01 : f32
    %36 = vector.broadcast %cst_12 : f32 to vector<16x128xf32>
    %37 = arith.mulf %36, %35 : vector<16x128xf32>
    %c0_13 = arith.constant 0 : index
    %38 = memref.load %arg4[%c0_13] : memref<2xf32, #tpu.memory_space<smem>>
    %39 = vector.broadcast %38 : f32 to vector<16x128xf32>
    %40 = arith.mulf %20, %39 : vector<16x128xf32>
    %c1_14 = arith.constant 1 : index
    %41 = memref.load %arg4[%c1_14] : memref<2xf32, #tpu.memory_space<smem>>
    %42 = vector.broadcast %41 : f32 to vector<16x128xf32>
    %43 = arith.mulf %37, %42 : vector<16x128xf32>
    %44 = arith.addf %40, %43 : vector<16x128xf32>
    %c0_15 = arith.constant 0 : index
    %45 = memref.load %arg5[%c0_15] : memref<1xf32, #tpu.memory_space<smem>>
    %46 = vector.broadcast %45 : f32 to vector<16x128xf32>
    %47 = arith.addf %44, %46 : vector<16x128xf32>
    %cst_16 = arith.constant 5.000000e-01 : f32
    %48 = vector.broadcast %cst_16 : f32 to vector<16x128xf32>
    %49 = arith.mulf %48, %47 : vector<16x128xf32>
    %50 = math.tanh %49 : vector<16x128xf32>
    %cst_17 = arith.constant 1.000000e+00 : f32
    %51 = vector.broadcast %cst_17 : f32 to vector<16x128xf32>
    %52 = arith.addf %50, %51 : vector<16x128xf32>
    %cst_18 = arith.constant 5.000000e-01 : f32
    %53 = vector.broadcast %cst_18 : f32 to vector<16x128xf32>
    %54 = arith.mulf %53, %52 : vector<16x128xf32>
    %c0_19 = arith.constant 0 : index
    %c0_20 = arith.constant 0 : index
    %55 = vector.load %arg6[%c0_19, %c0_20] : memref<16x128xf32, #tpu.memory_space<vmem>>, vector<16x128xf32>
    tpu.vector_store %arg6[%c0_19, %c0_20], %54 {strides = array<i32>} : memref<16x128xf32, #tpu.memory_space<vmem>>, vector<16x128xf32>,
    return
  }
  func.func @transform_0(%arg0: i32) -> (i32, i32, i32) {
    %c0_i32 = arith.constant 0 : i32
    %c0_i32_0 = arith.constant 0 : i32
    %c0_i32_1 = arith.constant 0 : i32
    return %c0_i32, %arg0, %c0_i32_0 : i32, i32, i32
  }
  func.func @transform_1(%arg0: i32) -> i32 {
    %c0_i32 = arith.constant 0 : i32
    %c0_i32_0 = arith.constant 0 : i32
    return %c0_i32 : i32
  }
  func.func @transform_2(%arg0: i32) -> i32 {
    %c0_i32 = arith.constant 0 : i32
    %c0_i32_0 = arith.constant 0 : i32
    return %c0_i32 : i32
  }
  func.func @transform_3(%arg0: i32) -> i32 {
    %c0_i32 = arith.constant 0 : i32
    %c0_i32_0 = arith.constant 0 : i32
    return %c0_i32 : i32
  }
  func.func @transform_4(%arg0: i32) -> i32 {
    %c0_i32 = arith.constant 0 : i32
    %c0_i32_0 = arith.constant 0 : i32
    return %c0_i32 : i32
  }
  func.func @transform_5(%arg0: i32) -> (i32, i32) {
    %c0_i32 = arith.constant 0 : i32
    %c0_i32_0 = arith.constant 0 : i32
    return %arg0, %c0_i32 : i32, i32
  }
}

</mosaic_0001>

<bundles_post_ra>
// kernel: tpu_custom_call.1
= control target key start
LH: loop header
LB: loop body
LE: loop exit
PB: predicated region body
PF: predicated region fallthrough
CT: control target
= control target key end

     0   :  { %11 = vsyncpa [#allocation4], 0  ;;  %s333_s0 = inlined_call_operand.hbm [shape: f32[2,16,128], index: 0, kind: input, shape index: {}]   ;;  %s334_s1 = inlined_call_operand.vmem [shape: f32[4], index: 1, kind: input, shape index: {}]   ;;  %s335_s2 = inlined_call_operand.vmem [shape: f32[2], index: 2, kind: input, shape index: {}]   ;;  %s336_s3 = inlined_call_operand.vmem [shape: f32[2], index: 3, kind: input, shape index: {}]   ;;  %s337_s4 = inlined_call_operand.<no memory space> [shape: f32[1], index: 4, kind: input, shape index: {}]   ;;  %s338_s5 = inlined_call_operand.hbm [shape: f32[16,128], index: 5, kind: output, shape index: {}]  }
   0x1   :  { %12 = vsyncpa [#allocation6], 0 }
   0x2   :  { %13 = vsyncpa [#allocation9], 0  ;;  %s43_s20 = sshll.u32 %s335_s2, 4  ;;  %s44_s20 = int_to_ptr.vmem [resolvable:$true] %s43_s20 }
   0x3   :  { %14 = vsyncpa [#allocation5], 0  ;;  %s188_s21 = scalar_lea.vmem %s44_s20, 16  ;;  %p193_p1 = scmp.lt.s32.totalorder %s44_s20, %s44_s20 }
   0x4   :  { %p189_p0 = scmp.ne.s32.totalorder %s44_s20, %s188_s21  ;;  %p194_p2 = scmp.lt.s32.totalorder %s188_s21, %s188_s21 }
   0x6   :  { %p195_p3 = por %p194_p2, %p193_p1 }
   0x8   :  { %p196_p4 = pnand %p195_p3, %p189_p0 }
   0xa   :  { %199 = shalt.err (!%p196_p4)
}
   0xb   :  { %s272_s22 = smov [#allocation8]   ;;  %s273_s23 = smov [#allocation3]  }
   0xc   :  { %46 = dma.vmem_to_smem %s44_s20, 16, %s272_s22, [#allocation9]  }
   0xd   :  { %s20_s24 = sshll.u32 %s273_s23, 4  ;;  %s21_s24 = int_to_ptr.vmem [resolvable:$true] %s20_s24 }
   0xe   :  { %s208_s25 = scalar_lea.vmem %s21_s24, 512  ;;  %p213_p6 = scmp.lt.s32.totalorder %s21_s24, %s21_s24 }
   0xf   :  { %p209_p5 = scmp.ne.s32.totalorder %s21_s24, %s208_s25  ;;  %p214_p7 = scmp.lt.s32.totalorder %s208_s25, %s208_s25 }
  0x11   :  { %p215_p8 = por %p214_p7, %p213_p6 }
  0x13   :  { %p216_p9 = pnand %p215_p8, %p209_p5 }
  0x15   :  { %219 = shalt.err (!%p216_p9)
}
  0x16   :  { %s274_s2 = smov 128   ;;  %s275_s26 = smov 8  }
  0x17   :  { %26 = dma.hbm_to_vmem [thread:$0]  %s333_s0, 512, %s21_s24, [#allocation4], %s274_s2, %s274_s2, %s275_s26  }
  0x18   :  { %s33_s6 = sshll.u32 %s334_s1, 4  ;;  %s53_s9 = sshll.u32 %s336_s3, 4  ;;  %s34_s6 = int_to_ptr.vmem [resolvable:$true] %s33_s6  ;;  %s54_s9 = int_to_ptr.vmem [resolvable:$true] %s53_s9 }
  0x19   :  { %s220_s10 = scalar_lea.vmem %s34_s6, 16  ;;  %p225_p11 = scmp.lt.s32.totalorder %s34_s6, %s34_s6 }
  0x1a   :  { %p221_p10 = scmp.ne.s32.totalorder %s34_s6, %s220_s10  ;;  %p226_p12 = scmp.lt.s32.totalorder %s220_s10, %s220_s10 }
  0x1c   :  { %p227_p13 = por %p226_p12, %p225_p11 }
  0x1e   :  { %p228_p0 = pnand %p227_p13, %p221_p10 }
  0x20   :  { %231 = shalt.err (!%p228_p0)
}
  0x21   :  { %s276_s11 = smov [#allocation7]   ;;  %s232_s0 = scalar_lea.vmem %s54_s9, 16 }
  0x22   :  { %36 = dma.vmem_to_smem %s34_s6, 16, %s276_s11, [#allocation6]  }
  0x23   :  { %p233_p1 = scmp.ne.s32.totalorder %s54_s9, %s232_s0  ;;  %p237_p2 = scmp.lt.s32.totalorder %s54_s9, %s54_s9 }
  0x24   :  { %p238_p3 = scmp.lt.s32.totalorder %s232_s0, %s232_s0 }
  0x26   :  { %p239_p4 = por %p238_p3, %p237_p2 }
  0x28   :  { %p240_p5 = pnand %p239_p4, %p233_p1 }
  0x2a   :  { %243 = shalt.err (!%p240_p5)
}
  0x2b   :  { %s277_s1 = smov [#allocation10]  }
  0x2c   :  { %56 = dma.vmem_to_smem %s54_s9, 16, %s277_s1, [#allocation9]  }
  0x2d   :  { %264 = dma.done.wait [#allocation4], 512  }
  0x2e   :  { %265 = vsyncadd [#allocation4], 4294966784 }
  0x2f   :  { %266 = dma.done.wait [#allocation6], 16  }
  0x30   :  { %267 = vsyncadd [#allocation6], 4294967280 }
  0x31   :  { %268 = dma.done.wait [#allocation9], 32  }
  0x32   :  { %269 = vsyncadd [#allocation9], 4294967264 }
  0x33   :  { %71 = sfence }
  0x34   :  { %s77_s3 = sld [smem:[#allocation7]]  ;;  %v72_v0 = vld [vmem:[#allocation3] sm:$0xff]  ;;  %v73_v1 = vld [vmem:[#allocation3 + $0x8] sm:$0xff]  ;;  %v75_v2 = vld [vmem:[#allocation3 + $0x10] sm:$0xff]  ;;  %v132_v47 = vstv %s337_s4  ;;  %s278_s21 = smov [#allocation11]  }
  0x35   :  { %s164_s12 = sld [smem:[#allocation7 + $0x2]]  ;;  %v76_v3 = vld [vmem:[#allocation3 + $0x18] sm:$0xff]  ;;  %s150_s22 = sshll.u32 %s278_s21, 4  ;;  %s151_s22 = int_to_ptr.vmem [resolvable:$true] %s150_s22 }
  0x36   :  { %s87_s13 = sld [smem:[#allocation8]]  ;;  %s244_s4 = scalar_lea.vmem %s151_s22, 256 }
  0x37   :  { %s165_s14 = sld [smem:[#allocation7 + $0x1]]  ;;  %p245_p6 = scmp.ne.s32.totalorder %s151_s22, %s244_s4 }
  0x38   :  { %s166_s15 = sld [smem:[#allocation7 + $0x3]]  ;;  %p249_p7 = scmp.lt.s32.totalorder %s151_s22, %s151_s22 }
  0x39   :  { %s167_s16 = sld [smem:[#allocation8 + $0x1]]  ;;  %p250_p8 = scmp.lt.s32.totalorder %s244_s4, %s244_s4 }
  0x3a   :  { %v78_v4 = vstv %s77_s3  ;;  %s121_s17 = sld [smem:[#allocation10]] }
  0x3b   :  { %v79_v5 = vmul.f32 %v78_v4, %v72_v0  ;;  %v82_v6 = vstv %s164_s12  ;;  %v80_v7 = vmul.f32 %v78_v4, %v73_v1  ;;  %s168_s18 = sld [smem:[#allocation10 + $0x1]]  ;;  %p251_p9 = por %p250_p8, %p249_p7 }
  0x3c   :  { %v83_v8 = vmul.f32 %v82_v6, %v75_v2  ;;  %v84_v9 = vmul.f32 %v82_v6, %v76_v3  ;;  %v88_v10 = vstv %s87_s13 }
  0x3d   :  { %v100_v11 = vstv %s165_s14  ;;  %p252_p10 = pnand %p251_p9, %p245_p6 }
  0x3e   :  { %v85_v12 = vadd.f32 %v83_v8, %v79_v5  ;;  %v101_v13 = vmul.f32 %v100_v11, %v72_v0  ;;  %v104_v14 = vstv %s166_s15  ;;  %v86_v15 = vadd.f32 %v84_v9, %v80_v7 }
  0x3f   :  { %v105_v16 = vmul.f32 %v104_v14, %v75_v2  ;;  %v102_v17 = vmul.f32 %v100_v11, %v73_v1  ;;  %v106_v18 = vmul.f32 %v104_v14, %v76_v3  ;;  %v110_v20 = vstv %s167_s16 }
  0x40   :  { %v89_v19 = vadd.f32 %v88_v10, %v85_v12  ;;  %v90_v21 = vadd.f32 %v88_v10, %v86_v15  ;;  %v122_v36 = vstv %s121_s17 }
  0x41   :  { %v107_v22 = vadd.f32 %v105_v16, %v101_v13  ;;  %v108_v23 = vadd.f32 %v106_v18, %v102_v17  ;;  %v126_v40 = vstv %s168_s18 }
  0x42   :  { %v91_v24 = vmul.f32 0.5, %v89_v19  ;;  %v92_v25 = vmul.f32 0.5, %v90_v21 }
  0x43   :  { %v111_v26 = vadd.f32 %v110_v20, %v107_v22  ;;  %v112_v27 = vadd.f32 %v110_v20, %v108_v23 }
  0x44   :  { %176 = vtanh.f32 %v91_v24 }
  0x45   :  { %v113_v28 = vmul.f32 0.5, %v111_v26  ;;  %178 = vtanh.f32 %v92_v25  ;;  %v114_v29 = vmul.f32 0.5, %v112_v27 }
  0x47   :  { %180 = vtanh.f32 %v113_v28 }
  0x48   :  { %182 = vtanh.f32 %v114_v29 }
  0x51   :  { %v177_v30 = vpop.eup %176 }
  0x52   :  { %v179_v31 = vpop.eup %178  ;;  %v95_v32 = vadd.f32 1.0, %v177_v30 }
  0x53   :  { %v96_v33 = vadd.f32 1.0, %v179_v31 }
  0x54   :  { %v181_v34 = vpop.eup %180  ;;  %v97_v35 = vmul.f32 0.5, %v95_v32 }
  0x55   :  { %v183_v37 = vpop.eup %182  ;;  %v117_v38 = vadd.f32 1.0, %v181_v34  ;;  %v98_v39 = vmul.f32 0.5, %v96_v33 }
  0x56   :  { %v118_v41 = vadd.f32 1.0, %v183_v37  ;;  %v123_v43 = vmul.f32 %v122_v36, %v97_v35 }
  0x57   :  { %v119_v42 = vmul.f32 0.5, %v117_v38  ;;  %v124_v45 = vmul.f32 %v122_v36, %v98_v39 }
  0x58   :  { %v120_v44 = vmul.f32 0.5, %v118_v41 }
  0x59   :  { %v127_v46 = vmul.f32 %v126_v40, %v119_v42 }
  0x5a   :  { %v128_v48 = vmul.f32 %v126_v40, %v120_v44 }
  0x5b   :  { %v129_v49 = vadd.f32 %v127_v46, %v123_v43 }
  0x5c   :  { %v130_v50 = vadd.f32 %v128_v48, %v124_v45 }
  0x5d   :  { %v133_v51 = vadd.f32 %v132_v47, %v129_v49 }
  0x5e   :  { %v134_v52 = vadd.f32 %v132_v47, %v130_v50 }
  0x5f   :  { %v135_v53 = vmul.f32 0.5, %v133_v51 }
  0x60   :  { %v136_v54 = vmul.f32 0.5, %v134_v52 }
  0x61   :  { %184 = vtanh.f32 %v135_v53 }
  0x62   :  { %186 = vtanh.f32 %v136_v54 }
  0x6e   :  { %v185_v55 = vpop.eup %184 }
  0x6f   :  { %v187_v56 = vpop.eup %186  ;;  %v139_v57 = vadd.f32 1.0, %v185_v55 }
  0x70   :  { %v140_v58 = vadd.f32 1.0, %v187_v56 }
  0x71   :  { %v141_v59 = vmul.f32 0.5, %v139_v57 }
  0x72   :  { %v142_v60 = vmul.f32 0.5, %v140_v58 }
  0x73   :  { %143 = vst [vmem:[#allocation11] sm:$0xff] %v141_v59 }
  0x74   :  { %144 = vst [vmem:[#allocation11 + $0x8] sm:$0xff] %v142_v60 }
  0x75   :  { %255 = shalt.err (!%p252_p10)
}
  0x76   :  { %156 = dma.vmem_to_hbm [thread:$0]  %s151_s22, 256, %s338_s5, [#allocation5], %s274_s2, %s274_s2, %s275_s26  }
  0x77   :  { %270 = dma.done.wait [#allocation5], 256  }
  0x78   :  { %271 = vsyncadd [#allocation5], 4294967040 }
  0x79   :  { %160 = vsyncpa [#allocation4], 1 }
  0x7a   :  { %161 = vsyncpa [#allocation5], 1 }
  0x7b   :  { %162 = vsyncpa [#allocation6], 1 }
  0x7c   :  { %163 = vsyncpa [#allocation9], 1 }

</bundles_post_ra>
